<compile_context>
chip_gen: v7x
topology: tpu7x:2x2x1
jax: 0.10.0
libtpu: 0.0.40
codegen_flags: <defaults>
</compile_context>

<pallas_src>
import jax
import jax.numpy as jnp
from jax import lax
from jax.experimental import pallas as pl
from jax.experimental.pallas import tpu as pltpu


def _make_up_kernel(Wp2, L):
    """Wp2 = W+2 (padded-frame row stride), L = H*Wp2 (flat output extent)."""

    def kernel(x_ref, w_ref, b_ref, o_ref):
        # x_ref: (1, Cin', (H+2)*(W+2) + 2)  flat zero-padded source frame
        # w_ref: (4*Cout, 9*Cin')            phase+tap-merged weights
        # b_ref: (4*Cout, 1)
        # o_ref: (1, 4*Cout, L)              [(rp,cp,o), r*(W+2)+c]
        # 9 tap operands = static lane-offset slices of the flat frame; the
        # contraction dim (channels) already sits in sublanes, so stacking
        # them is a tile-aligned sublane concat (Cin' is a multiple of 8).
        pieces = [x_ref[0, :, pl.ds(dr * Wp2 + dc, L)]
                  for dr in range(3) for dc in range(3)]
        rhs = jnp.concatenate(pieces, axis=0)            # (9*Cin', L)
        acc = lax.dot_general(
            w_ref[...], rhs, (((1,), (0,)), ((), ())),
            preferred_element_type=jnp.float32)          # (4*Cout, L)
        o_ref[0] = (acc + b_ref[...]).astype(o_ref.dtype)

    return kernel


def up_forward(x_nchw, t_embed, extra_feats, w_oihw, bias):
    # Up.forward ignores t_embed and extra_feats (matches the PyTorch module).
    del t_embed, extra_feats
    N, Cin, H, W = x_nchw.shape
    Cout = w_oihw.shape[0]
    Wp2 = W + 2
    Spad = (H + 2) * Wp2          # flat padded-frame length
    L = H * Wp2                   # flat output extent per image

    # Channels rounded up to a full f32 sublane tile so the in-kernel concat
    # and matmul operands are tile-aligned (no-op when Cin % 8 == 0).
    Cin_p = max(8, -(-Cin // 8) * 8)

    # ---- parameter prep (tiny; constant-folds / hoists under jit) ----------
    # Row/col fold: output phase rp reads padded-source row offset
    # dr = (rp + dj + 1)//2 for conv tap dj (same for columns).
    A = jnp.array([[[1, 0, 0], [0, 1, 1], [0, 0, 0]],
                   [[0, 0, 0], [1, 1, 0], [0, 0, 1]]], w_oihw.dtype)  # [phase, doff, tap]
    wb6 = jnp.einsum('pad,qbe,oide->pqoabi', A, A, w_oihw)   # (2,2,Cout,3,3,Cin)
    wb6 = jnp.pad(wb6, ((0, 0),) * 5 + ((0, Cin_p - Cin),))
    wbig = wb6.reshape(4 * Cout, 9 * Cin_p)
    btile = jnp.tile(bias, 4).reshape(4 * Cout, 1)           # bias is zero at init,
    #                                                          kept for generality.

    # ---- input prep: channel pad, zero-pad spatial by 1, flatten frame -----
    xp = jnp.pad(x_nchw, ((0, 0), (0, Cin_p - Cin), (1, 1), (1, 1)))
    xflat = xp.reshape(N, Cin_p, Spad)
    xflat = jnp.pad(xflat, ((0, 0), (0, 0), (0, 2)))          # tail so all 9 slices fit

    kernel = _make_up_kernel(Wp2, L)
    out = pl.pallas_call(
        kernel,
        out_shape=jax.ShapeDtypeStruct((N, 4 * Cout, L), x_nchw.dtype),
        grid=(N,),
        in_specs=[
            pl.BlockSpec((1, Cin_p, Spad + 2), lambda n: (n, 0, 0)),
            pl.BlockSpec((4 * Cout, 9 * Cin_p), lambda n: (0, 0)),
            pl.BlockSpec((4 * Cout, 1), lambda n: (0, 0)),
        ],
        out_specs=pl.BlockSpec((1, 4 * Cout, L), lambda n: (n, 0, 0)),
        compiler_params=pltpu.CompilerParams(
            dimension_semantics=("parallel",)),
    )(xflat, wbig, btile)

    # ---- phase re-interleave back to NCHW (layout plumbing only) -----------
    y = out.reshape(N, 2, 2, Cout, H, Wp2)[..., :W]           # (N,rp,cp,Cout,H,W)
    y = jnp.transpose(y, (0, 3, 4, 1, 5, 2))                  # (N,Cout,H,rp,W,cp)
    return y.reshape(N, Cout, 2 * H, 2 * W)


if __name__ == "__main__":
    key = jax.random.PRNGKey(0)
    N, Cin, Cout, H, W = 2, 4, 8, 16, 16
    k1, k2, k3, k4 = jax.random.split(key, 4)

    x = jax.random.normal(k1, (N, Cin, H, W), jnp.float32)
    t_embed = jax.random.normal(k2, (N, 32), jnp.float32)             # unused by Up
    extra_feats = jax.random.normal(k3, (N, Cin, H, W), jnp.float32)  # unused by Up

    # MyConv2d init: Conv2d default kaiming_uniform (bound = 1/sqrt(fan_in)),
    # init_scale=1 (no-op), bias zeroed.
    fan_in = Cin * 3 * 3
    bound = 1.0 / (fan_in ** 0.5)
    w = jax.random.uniform(k4, (Cout, Cin, 3, 3), jnp.float32, -bound, bound)
    b = jnp.zeros((Cout,), jnp.float32)

    out = jax.block_until_ready(
        jax.jit(up_forward)(x, t_embed, extra_feats, w, b))

    # Reference: XLA conv on the explicitly upsampled input.
    x_nhwc = jnp.transpose(x, (0, 2, 3, 1))
    xu = jnp.repeat(jnp.repeat(x_nhwc, 2, axis=1), 2, axis=2)
    ref = lax.conv_general_dilated(
        xu, jnp.transpose(w, (2, 3, 1, 0)), (1, 1), "SAME",
        dimension_numbers=("NHWC", "HWIO", "NHWC")) + b
    ref = jnp.transpose(ref, (0, 3, 1, 2))

    assert out.shape == (N, Cout, 2 * H, 2 * W)
    assert jnp.allclose(out, ref, atol=1e-4, rtol=1e-4)
    print("KERNEL_OK")
</pallas_src>

<mosaic_0001>
module attributes {stable_mosaic.version = 11 : i64} {
  func.func @kernel(%arg0: i32, %arg1: memref<1x8x326xf32, #tpu.memory_space<vmem>>, %arg2: memref<32x72xf32, #tpu.memory_space<vmem>>, %arg3: memref<32x1xf32, #tpu.memory_space<vmem>>, %arg4: memref<1x32x288xf32, #tpu.memory_space<vmem>>) attributes {dimension_semantics = [#tpu.dimension_semantics<parallel>], iteration_bounds = array<i64: 2>, scalar_prefetch = 0 : i64, scratch_operands = 0 : i64, tpu.core_type = #tpu.core_type<tc>, window_params = [{transform_indices = @transform_0, window_bounds = array<i64: 1, 8, 326>}, {pipeline_mode = #tpu.pipeline_mode<synchronous>, transform_indices = @transform_1, window_bounds = array<i64: 32, 72>}, {pipeline_mode = #tpu.pipeline_mode<synchronous>, transform_indices = @transform_2, window_bounds = array<i64: 32, 1>}, {transform_indices = @transform_3, window_bounds = array<i64: 1, 32, 288>}]} {
    %c0 = arith.constant 0 : index
    %c0_0 = arith.constant 0 : index
    %c0_1 = arith.constant 0 : index
    %0 = vector.load %arg1[%c0, %c0_0, %c0_1] : memref<1x8x326xf32, #tpu.memory_space<vmem>>, vector<1x8x288xf32>
    %1 = vector.shape_cast %0 : vector<1x8x288xf32> to vector<8x288xf32>
    %c0_2 = arith.constant 0 : index
    %c0_3 = arith.constant 0 : index
    %c1 = arith.constant 1 : index
    %2 = vector.load %arg1[%c0_2, %c0_3, %c1] : memref<1x8x326xf32, #tpu.memory_space<vmem>>, vector<1x8x288xf32>
    %3 = vector.shape_cast %2 : vector<1x8x288xf32> to vector<8x288xf32>
    %c0_4 = arith.constant 0 : index
    %c0_5 = arith.constant 0 : index
    %c2 = arith.constant 2 : index
    %4 = vector.load %arg1[%c0_4, %c0_5, %c2] : memref<1x8x326xf32, #tpu.memory_space<vmem>>, vector<1x8x288xf32>
    %5 = vector.shape_cast %4 : vector<1x8x288xf32> to vector<8x288xf32>
    %c0_6 = arith.constant 0 : index
    %c0_7 = arith.constant 0 : index
    %c18 = arith.constant 18 : index
    %6 = vector.load %arg1[%c0_6, %c0_7, %c18] : memref<1x8x326xf32, #tpu.memory_space<vmem>>, vector<1x8x288xf32>
    %7 = vector.shape_cast %6 : vector<1x8x288xf32> to vector<8x288xf32>
    %c0_8 = arith.constant 0 : index
    %c0_9 = arith.constant 0 : index
    %c19 = arith.constant 19 : index
    %8 = vector.load %arg1[%c0_8, %c0_9, %c19] : memref<1x8x326xf32, #tpu.memory_space<vmem>>, vector<1x8x288xf32>
    %9 = vector.shape_cast %8 : vector<1x8x288xf32> to vector<8x288xf32>
    %c0_10 = arith.constant 0 : index
    %c0_11 = arith.constant 0 : index
    %c20 = arith.constant 20 : index
    %10 = vector.load %arg1[%c0_10, %c0_11, %c20] : memref<1x8x326xf32, #tpu.memory_space<vmem>>, vector<1x8x288xf32>
    %11 = vector.shape_cast %10 : vector<1x8x288xf32> to vector<8x288xf32>
    %c0_12 = arith.constant 0 : index
    %c0_13 = arith.constant 0 : index
    %c36 = arith.constant 36 : index
    %12 = vector.load %arg1[%c0_12, %c0_13, %c36] : memref<1x8x326xf32, #tpu.memory_space<vmem>>, vector<1x8x288xf32>
    %13 = vector.shape_cast %12 : vector<1x8x288xf32> to vector<8x288xf32>
    %c0_14 = arith.constant 0 : index
    %c0_15 = arith.constant 0 : index
    %c37 = arith.constant 37 : index
    %14 = vector.load %arg1[%c0_14, %c0_15, %c37] : memref<1x8x326xf32, #tpu.memory_space<vmem>>, vector<1x8x288xf32>
    %15 = vector.shape_cast %14 : vector<1x8x288xf32> to vector<8x288xf32>
    %c0_16 = arith.constant 0 : index
    %c0_17 = arith.constant 0 : index
    %c38 = arith.constant 38 : index
    %16 = vector.load %arg1[%c0_16, %c0_17, %c38] : memref<1x8x326xf32, #tpu.memory_space<vmem>>, vector<1x8x288xf32>
    %17 = vector.shape_cast %16 : vector<1x8x288xf32> to vector<8x288xf32>
    %18 = tpu.concatenate %1, %3, %5, %7, %9, %11, %13, %15, %17 in 0 : vector<8x288xf32>, vector<8x288xf32>, vector<8x288xf32>, vector<8x288xf32>, vector<8x288xf32>, vector<8x288xf32>, vector<8x288xf32>, vector<8x288xf32>, vector<8x288xf32> -> vector<72x288xf32>
    %c0_18 = arith.constant 0 : index
    %c0_19 = arith.constant 0 : index
    %19 = vector.load %arg2[%c0_18, %c0_19] : memref<32x72xf32, #tpu.memory_space<vmem>>, vector<32x72xf32>
    %cst = arith.constant dense<0.000000e+00> : vector<32x288xf32>
    %20 = tpu.matmul %19, %18, %cst {dimension_numbers = #tpu.dot_dimension_numbers<[1], [0], [0], [1], [0, 0, 1, 1], [], []>} : vector<32x72xf32>, vector<72x288xf32>, vector<32x288xf32> -> vector<32x288xf32>
    %c0_20 = arith.constant 0 : index
    %c0_21 = arith.constant 0 : index
    %21 = vector.load %arg3[%c0_20, %c0_21] : memref<32x1xf32, #tpu.memory_space<vmem>>, vector<32x1xf32>
    %22 = vector.broadcast %21 : vector<32x1xf32> to vector<32x288xf32>
    %23 = arith.addf %20, %22 : vector<32x288xf32>
    %c0_22 = arith.constant 0 : index
    %c0_23 = arith.constant 0 : index
    %c0_24 = arith.constant 0 : index
    %24 = vector.load %arg4[%c0_22, %c0_23, %c0_24] : memref<1x32x288xf32, #tpu.memory_space<vmem>>, vector<1x32x288xf32>
    %25 = vector.shape_cast %24 : vector<1x32x288xf32> to vector<32x288xf32>
    %26 = vector.shape_cast %23 : vector<32x288xf32> to vector<1x32x288xf32>
    tpu.vector_store %arg4[%c0_22, %c0_23, %c0_24], %26 {strides = array<i32>} : memref<1x32x288xf32, #tpu.memory_space<vmem>>, vector<1x32x288xf32>,
    return
  }
  func.func @transform_0(%arg0: i32) -> (i32, i32, i32) {
    %c0_i32 = arith.constant 0 : i32
    %c0_i32_0 = arith.constant 0 : i32
    %c0_i32_1 = arith.constant 0 : i32
    return %arg0, %c0_i32, %c0_i32_0 : i32, i32, i32
  }
  func.func @transform_1(%arg0: i32) -> (i32, i32) {
    %c0_i32 = arith.constant 0 : i32
    %c0_i32_0 = arith.constant 0 : i32
    %c0_i32_1 = arith.constant 0 : i32
    return %c0_i32, %c0_i32_0 : i32, i32
  }
  func.func @transform_2(%arg0: i32) -> (i32, i32) {
    %c0_i32 = arith.constant 0 : i32
    %c0_i32_0 = arith.constant 0 : i32
    %c0_i32_1 = arith.constant 0 : i32
    return %c0_i32, %c0_i32_0 : i32, i32
  }
  func.func @transform_3(%arg0: i32) -> (i32, i32, i32) {
    %c0_i32 = arith.constant 0 : i32
    %c0_i32_0 = arith.constant 0 : i32
    %c0_i32_1 = arith.constant 0 : i32
    return %arg0, %c0_i32, %c0_i32_0 : i32, i32, i32
  }
}

</mosaic_0001>

<bundles_post_ra>
// kernel: tile.8
= control target key start
LH: loop header
LB: loop body
LE: loop exit
PB: predicated region body
PF: predicated region fallthrough
CT: control target
= control target key end

     0   :  { %s22_s0 = inlined_call_operand.vmem [shape: f32[8], index: 0, kind: input, shape index: {}]   ;;  %s23_s1 = inlined_call_operand.vmem [shape: f32[4,8], index: 1, kind: output, shape index: {}]  }
   0x1   :  { %v4_v0 = vld [vmem:[%s22_s0] ss:$0 sm:$0xff] }
   0x2   :  { %5 = vst [vmem:[%s23_s1] sm:$0xf] %v4_v0 }

// kernel: tile.0
= control target key start
LH: loop header
LB: loop body
LE: loop exit
PB: predicated region body
PF: predicated region fallthrough
CT: control target
= control target key end

     0   :  { %s66_s8 = smov 125   ;;  %vm7_vm0 = vcmask 7168   ;;  %s67_s11 = smov 126   ;;  %s117_s0 = inlined_call_operand.vmem [shape: f32[4,8], index: 0, kind: input, shape index: {}]   ;;  %s118_s1 = inlined_call_operand.vmem [shape: f32[32,1], index: 1, kind: output, shape index: {}]  }
   0x1   :  { %v4_v0 = vld [vmem:[%s117_s0] sm:$0xf]  ;;  %s65_s0 = smov 127   ;;  %s68_s12 = smov 124  }
   0x2   :  { %5 = vst [vmem:[#allocation0] sm:$0xf] %v4_v0  ;;  %s69_s13 = smov 123   ;;  %s70_s14 = smov 122  }
   0x3   :  { %s71_s15 = smov 121  }
   0x9   :  { %v9_v1 = vld [vmem:[#allocation0] sm:$0xf]  }
   0xa   :  { %v21_v2 = vld [vmem:[#allocation0] sm:$0xf]   ;;  %10 = vrot.lane.b32.xlu0 %v9_v1, %s65_s0 }
   0xb   :  { %22 = vrot.lane.b32.xlu1 %v21_v2, %s66_s8  ;;  %v15_v3 = vld [vmem:[#allocation0] sm:$0xf]  }
   0xc   :  { %v27_v4 = vld [vmem:[#allocation0] sm:$0xf]  }
   0xd   :  { %v6_v5 = vld [vmem:[#allocation0] sm:$0xf]  }
   0xe   :  { %8 = vst.msk [vmem:[%s118_s1] ss:$8 sm:$0xf] %vm7_vm0, %v6_v5   ;;  %16 = vrot.lane.b32.xlu0 %v15_v3, %s67_s11  ;;  %v33_v6 = vld [vmem:[#allocation0] sm:$0xf]  }
   0xf   :  { %28 = vrot.lane.b32.xlu1 %v27_v4, %s68_s12  ;;  %v39_v7 = vld [vmem:[#allocation0] sm:$0xf]  }
  0x10   :  { %v45_v8 = vld [vmem:[#allocation0] sm:$0xf]  }
  0x12   :  { %34 = vrot.lane.b32.xlu0 %v33_v6, %s69_s13 }
  0x13   :  { %40 = vrot.lane.b32.xlu1 %v39_v7, %s70_s14 }
  0x16   :  { %46 = vrot.lane.b32.xlu0 %v45_v8, %s71_s15 }
  0x7c   :  { %v11_v9 = vpop.permute.xlu0 %10  }
  0x7d   :  { %v23_v10 = vpop.permute.xlu1 %22   ;;  %51 = vst.msk [vmem:[%s118_s1 + $0x1] ss:$8 sm:$0xf] %vm7_vm0, %v11_v9  }
  0x7e   :  { %53 = vst.msk [vmem:[%s118_s1 + $0x3] ss:$8 sm:$0xf] %vm7_vm0, %v23_v10  }
  0x80   :  { %v17_v11 = vpop.permute.xlu0 %16  }
  0x81   :  { %v29_v12 = vpop.permute.xlu1 %28   ;;  %52 = vst.msk [vmem:[%s118_s1 + $0x2] ss:$8 sm:$0xf] %vm7_vm0, %v17_v11  }
  0x82   :  { %54 = vst.msk [vmem:[%s118_s1 + $0x4] ss:$8 sm:$0xf] %vm7_vm0, %v29_v12  }
  0x84   :  { %v35_v13 = vpop.permute.xlu0 %34  }
  0x85   :  { %v41_v14 = vpop.permute.xlu1 %40   ;;  %55 = vst.msk [vmem:[%s118_s1 + $0x5] ss:$8 sm:$0xf] %vm7_vm0, %v35_v13  }
  0x86   :  { %56 = vst.msk [vmem:[%s118_s1 + $0x6] ss:$8 sm:$0xf] %vm7_vm0, %v41_v14  }
  0x88   :  { %v47_v15 = vpop.permute.xlu0 %46  }
  0x89   :  { %57 = vst.msk [vmem:[%s118_s1 + $0x7] ss:$8 sm:$0xf] %vm7_vm0, %v47_v15  }

// kernel: up_forward.1
= control target key start
LH: loop header
LB: loop body
LE: loop exit
PB: predicated region body
PF: predicated region fallthrough
CT: control target
= control target key end

     0   :  { %s737_s12 = smov 0   ;;  %s836_s0 = inlined_call_operand.vmem [shape: f32[2,8,326], index: 0, kind: input, shape index: {}]   ;;  %s837_s1 = inlined_call_operand.vmem [shape: f32[32,72], index: 1, kind: input, shape index: {}]   ;;  %s838_s2 = inlined_call_operand.vmem [shape: f32[32,1], index: 2, kind: input, shape index: {}]   ;;  %s839_s3 = inlined_call_operand.vmem [shape: f32[2,32,288], index: 3, kind: output, shape index: {}]  }
   0x1 LB: > { %s556_s13 = sadd.s32 4294967295, %s705_s12   ;;  %p560_p0 = scmp.ge.s32.totalorder %s705_s12, 1  ;;  %s705_s12 = sphi %s737_s12, %s13_s12  }
   0x2   : > { %p137_p1 = scmp.lt.s32.totalorder %s705_s12, 3 }
   0x4   : > { %p138_p2 = pnand %p560_p0, %p137_p1 }
   0x5   : > { %p161_p3 = scmp.lt.s32.totalorder (!%p138_p2), %s556_s13, 1  ;;  %s707_s18 = smov (!%p138_p2), 126   ;;  %v764_v4 = vld [vmem:[%s837_s1] sm:$0xff] (!%p138_p2)  ;;  %vm301_vm0 = vcmask (!%p138_p2), 588800   ;;  %v714_v5 = vmov (!%p138_p2), 0.0   ;;  %v278_v7 = vld [vmem:[%s838_s2 + $0x8] sm:$0xff] (!%p138_p2) }
   0x6   : > { %141 = sbr.rel (%p138_p2) target bundleno = 397 (0x18d), region = 32  ;;  %s708_s19 = smov (!%p138_p2), 127   ;;  %378 = vmatprep.mubr.f32.mxu0 (!%p138_p2), %v714_v5  ;;  %604 = vmatprep.mubr.msk.f32.mxu1 (!%p138_p2), %vm301_vm0, %v764_v4  ;;  %v277_v6 = vld [vmem:[%s838_s2] sm:$0xff] (!%p138_p2)  ;;  %v716_v8 = vmov (!%p138_p2), 0   ;;  %v279_v9 = vld [vmem:[%s838_s2 + $0x10] sm:$0xff] (!%p138_p2)  ;;  %v280_v10 = vld [vmem:[%s838_s2 + $0x18] sm:$0xff] (!%p138_p2) }
   0x7   : > { %s709_s20 = smov (!%p138_p2), 110   ;;  %s710_s21 = smov (!%p138_p2), 108   ;;  %697 = vset.pattern.permute.xlu1 (!%p138_p2), %v716_v8  ;;  %698 = vset.pattern.permute.xlu0 (!%p138_p2), %v716_v8  ;;  %vm183_vm1 = vcmask (!%p138_p2), 1039360   ;;  %vm207_vm2 = vcmask (!%p138_p2), 900096   ;;  %vm195_vm3 = vcmask (!%p138_p2), 1031168   ;;  %vm231_vm4 = vcmask (!%p138_p2), 883712  }
   0x8   : > { %s711_s22 = smov (!%p138_p2), 109   ;;  %s712_s25 = smov (!%p138_p2), 91   ;;  %vm219_vm5 = vcmask (!%p138_p2), 891904   ;;  %vm255_vm6 = vcmask (!%p138_p2), 744448   ;;  %vm243_vm7 = vcmask (!%p138_p2), 752640   ;;  %vm267_vm8 = vcmask (!%p138_p2), 736256  }
   0x9   : > { %s713_s26 = smov (!%p138_p2), 92   ;;  %s715_s27 = smov (!%p138_p2), 90   ;;  %vm490_vm9 = vcmask (!%p138_p2), 261120  }
   0xd   : > { %s841_s13 = smov (!%p161_p3, %s556_s13), 1 }
   0xe   : > { %s642_s14 = smul.u32 24, %s841_s13 }
  0x10   : > { %s165_s17 = scalar_lea.vmem %s836_s0, %s642_s14 }
  0x11   : > { %v751_v0 = vld [vmem:[%s165_s17 + $0x8] sm:$0xff]  ;;  %v173_v1 = vld [vmem:[%s165_s17 + $0x10] sm:$0xff]  ;;  %v754_v3 = vld [vmem:[%s165_s17] sm:$0xff]  ;;  %s643_s17 = smul.u32 96, %s841_s13 }
  0x12   : > { %v667_v2 = vpack.i.bf16 %v173_v1, %v751_v0 }
  0x14   : > { %668 = vrot.lane.b32.xlu1 %v667_v2, %s707_s18  ;;  %663 = vrot.lane.b32.xlu0 %v667_v2, %s708_s19 }
  0x18   : > { %673 = vrot.lane.b32.xlu1 %v667_v2, %s709_s20  ;;  %177 = vrot.lane.b32.xlu0 %v754_v3, %s708_s19 }
  0x1c   : > { %201 = vrot.lane.b32.xlu1 %v754_v3, %s709_s20  ;;  %189 = vrot.lane.b32.xlu0 %v754_v3, %s707_s18  ;;  %s815_s20 = scalar_lea.vmem %s839_s3, %s643_s17 }
  0x20   : > { %683 = vrot.lane.b32.xlu1 %v667_v2, %s710_s21  ;;  %678 = vrot.lane.b32.xlu0 %v667_v2, %s711_s22 }
  0x24   : > { %225 = vrot.lane.b32.xlu1 %v754_v3, %s710_s21  ;;  %213 = vrot.lane.b32.xlu0 %v754_v3, %s711_s22 }
  0x28   : > { %693 = vrot.lane.b32.xlu1 %v667_v2, %s712_s25  ;;  %688 = vrot.lane.b32.xlu0 %v667_v2, %s713_s26 }
  0x2c   : > { %249 = vrot.lane.b32.xlu1 %v754_v3, %s712_s25  ;;  %237 = vrot.lane.b32.xlu0 %v754_v3, %s713_s26 }
  0x30   : > { %265 = vrot.lane.b32.xlu1 %v173_v1, %s715_s27  ;;  %263 = vrot.lane.b32.xlu0 %v751_v0, %s715_s27 }
  0x34   : > { %261 = vrot.lane.b32.xlu0 %v754_v3, %s715_s27  ;;  %283 = vperm.xlu1 %697, %v277_v6  }
  0x38   : > { %288 = vperm.xlu0 %698, %v278_v7   ;;  %293 = vperm.xlu1 %697, %v279_v9   ;;  %v275_v7 = vld [vmem:[%s837_s1 + $0x10] sm:$0xff]  ;;  %v276_v9 = vld [vmem:[%s837_s1 + $0x18] sm:$0xff] }
  0x3c   : > { %298 = vperm.xlu1 %697, %v280_v10  }
  0x86   : > { %v669_v11 = vpop.permute.xlu1 %668  ;;  %v664_v12 = vpop.permute.xlu0 %663 }
  0x87   : > { %v666_v13 = vunpack.i.h.bf16 %v664_v12  ;;  %v665_v14 = vunpack.i.l.bf16 %v664_v12  ;;  %v671_v15 = vunpack.i.h.bf16 %v669_v11  ;;  %v670_v16 = vunpack.i.l.bf16 %v669_v11 }
  0x89   : > { %v626_v17 = vpack.c.bf16 %v666_v13, %v173_v1  ;;  %v185_v18 = vsel %vm183_vm1, %v665_v14, %v666_v13  ;;  %v197_v27 = vsel %vm195_vm3, %v670_v16, %v671_v15 }
  0x8a   : > { %v674_v19 = vpop.permute.xlu1 %673  ;;  %v178_v20 = vpop.permute.xlu0 %177  ;;  %v610_v21 = vpack.c.bf16 %v185_v18, %v751_v0 }
  0x8b   : > { %v676_v22 = vunpack.i.h.bf16 %v674_v19  ;;  %v675_v23 = vunpack.i.l.bf16 %v674_v19  ;;  %v184_v24 = vsel %vm183_vm1, %v178_v20, %v665_v14  ;;  %627 = vmatprep.subr.bf16.mxu1 %v626_v17 }
  0x8c   : > { %611 = vmatprep.subr.bf16.mxu0 %v610_v21  ;;  %629 = vmatpush3.bf16.msra.mxu1 %v626_v17  ;;  %v612_v25 = vpack.c.bf16 %v184_v24, %v754_v3  ;;  %v274_v3 = vld [vmem:[%s837_s1 + $0x8] sm:$0xff] }
  0x8d   : > { %v630_v26 = vpack.c.bf16 %v676_v22, %v671_v15  ;;  %v209_v28 = vsel %vm207_vm2, %v675_v23, %v676_v22 }
  0x8e   : > { %v202_v29 = vpop.permute.xlu1 %201  ;;  %613 = vmatpush1.bf16.msra.mxu0 %v612_v25  ;;  %v190_v30 = vpop.permute.xlu0 %189  ;;  %v614_v31 = vpack.c.bf16 %v209_v28, %v197_v27 }
  0x8f   : > { %v208_v32 = vsel %vm207_vm2, %v202_v29, %v675_v23  ;;  %v196_v33 = vsel %vm195_vm3, %v190_v30, %v670_v16  ;;  %631 = vmatprep.subr.bf16.mxu1 %v630_v26 }
  0x90   : > { %v616_v34 = vpack.c.bf16 %v208_v32, %v196_v33  ;;  %615 = vmatprep.subr.bf16.mxu0 %v614_v31  ;;  %633 = vmatpush3.bf16.msra.mxu1 %v630_v26 }
  0x92   : > { %v684_v35 = vpop.permute.xlu1 %683  ;;  %617 = vmatpush1.bf16.msra.mxu0 %v616_v34  ;;  %v679_v36 = vpop.permute.xlu0 %678 }
  0x93   : > { %v686_v37 = vunpack.i.h.bf16 %v684_v35  ;;  %v685_v38 = vunpack.i.l.bf16 %v684_v35  ;;  %v681_v39 = vunpack.i.h.bf16 %v679_v36  ;;  %v680_v40 = vunpack.i.l.bf16 %v679_v36 }
  0x95   : > { %v634_v41 = vpack.c.bf16 %v686_v37, %v681_v39  ;;  %v221_v42 = vsel %vm219_vm5, %v680_v40, %v681_v39  ;;  %v233_v43 = vsel %vm231_vm4, %v685_v38, %v686_v37 }
  0x96   : > { %v226_v44 = vpop.permute.xlu1 %225  ;;  %v214_v45 = vpop.permute.xlu0 %213  ;;  %v618_v46 = vpack.c.bf16 %v233_v43, %v221_v42 }
  0x97   : > { %v232_v47 = vsel %vm231_vm4, %v226_v44, %v685_v38  ;;  %v220_v48 = vsel %vm219_vm5, %v214_v45, %v680_v40  ;;  %635 = vmatprep.subr.bf16.mxu1 %v634_v41 }
  0x98   : > { %v620_v49 = vpack.c.bf16 %v232_v47, %v220_v48  ;;  %619 = vmatprep.subr.bf16.mxu0 %v618_v46  ;;  %637 = vmatpush3.bf16.msra.mxu1 %v634_v41 }
  0x9a   : > { %v694_v50 = vpop.permute.xlu1 %693  ;;  %v689_v51 = vpop.permute.xlu0 %688  ;;  %621 = vmatpush1.bf16.msra.mxu0 %v620_v49 }
  0x9b   : > { %v696_v52 = vunpack.i.h.bf16 %v694_v50  ;;  %v695_v53 = vunpack.i.l.bf16 %v694_v50  ;;  %v691_v54 = vunpack.i.h.bf16 %v689_v51  ;;  %v690_v55 = vunpack.i.l.bf16 %v689_v51 }
  0x9d   : > { %v638_v56 = vpack.c.bf16 %v696_v52, %v691_v54  ;;  %v245_v57 = vsel %vm243_vm7, %v690_v55, %v691_v54  ;;  %v257_v58 = vsel %vm255_vm6, %v695_v53, %v696_v52 }
  0x9e   : > { %v250_v59 = vpop.permute.xlu1 %249  ;;  %v238_v60 = vpop.permute.xlu0 %237  ;;  %v622_v61 = vpack.c.bf16 %v257_v58, %v245_v57 }
  0x9f   : > { %v256_v62 = vsel %vm255_vm6, %v250_v59, %v695_v53  ;;  %v244_v63 = vsel %vm243_vm7, %v238_v60, %v690_v55  ;;  %639 = vmatprep.subr.bf16.mxu1 %v638_v56 }
  0xa0   : > { %v624_v0 = vpack.c.bf16 %v256_v62, %v244_v63  ;;  %623 = vmatprep.subr.bf16.mxu0 %v622_v61  ;;  %641 = vmatpush3.bf16.msra.mxu1 %v638_v56 }
  0xa2   : > { %v266_v1 = vpop.permute.xlu1 %265  ;;  %v264_v2 = vpop.permute.xlu0 %263  ;;  %625 = vmatpush1.bf16.msra.mxu0 %v624_v0 }
  0xa3   : > { %v269_v6 = vsel %vm267_vm8, %v264_v2, %v266_v1  ;;  %602 = vmatprep.subr.mxu1 %v266_v1 }
  0xa4   : > { %330 = vmatprep.subr.mxu0 %v269_v6  ;;  %603 = vmatpush3.msra.mxu1 %v266_v1 }
  0xa5   : > { %605 = vmatmul.mubr.msk.f32.vlgmr.msra.gmra.mrb[0].mxu1 %vm301_vm0, %v274_v3 }
  0xa6   : > { %v262_v8 = vpop.permute.xlu0 %261  ;;  %607 = vmatprep.mubr.msk.f32.mxu1 %vm301_vm0, %v275_v7 }
  0xa7   : > { %v268_v10 = vsel %vm267_vm8, %v262_v8, %v264_v2 }
  0xa8   : > { %331 = vmatpush1.msra.mxu0 %v268_v10 }
  0xa9   : > { %563 = vmatmul.mubr.msk.f32.vlgmr.msra.gmra.mrb[0].mxu0 %vm301_vm0, %v764_v4  ;;  %608 = vmatmul.mubr.msk.f32.gmra.mrb[2].mxu1 %vm301_vm0, %v276_v9 }
  0xaa   : > { %384 = vmatprep.mubr.f32.mxu0 %v714_v5 }
  0xad   : > { %564 = vmatmul.mubr.msk.f32.gmra.mrb[2].mxu0 %vm301_vm0, %v274_v3 }
  0xae   : > { %390 = vmatprep.mubr.f32.mxu0 %v714_v5 }
  0xb1   : > { %565 = vmatmul.mubr.msk.f32.gmra.mrb[4].mxu0 %vm301_vm0, %v275_v7 }
  0xb2   : > { %396 = vmatprep.mubr.f32.mxu0 %v714_v5 }
  0xb3   : > { %v284_v11 = vpop.permute.xlu1 %283 }
  0xb5   : > { %566 = vmatmul.mubr.msk.f32.gmra.mrb[6].mxu0 %vm301_vm0, %v276_v9 }
  0xb7   : > { %v294_v12 = vpop.permute.xlu1 %293  ;;  %v289_v14 = vpop.permute.xlu0 %288 }
  0xbb   : > { %v299_v16 = vpop.permute.xlu1 %298 }
 0x178   : > { %v606_v13 = vpop.f32.mrb[0].mxu1 }
 0x179   : > { %v469_v4 = vpop.f32.mrb[1].mxu1  ;;  %v475_v15 = vadd.f32 %v606_v13, %v289_v14 }
 0x17a   : > { %v470_v5 = vadd.f32 %v469_v4, %v284_v11 }
 0x17b   : > { %494 = vst.msk [vmem:[%s815_s20 + $0x28] sm:$0xff] %vm490_vm9, %v475_v15 }
 0x17c   : > { %v380_v17 = vpop.f32.mrb[0].mxu0  ;;  %491 = vst.msk [vmem:[%s815_s20 + $0x10] sm:$0xff] %vm490_vm9, %v470_v5  ;;  %v609_v18 = vpop.f32.mrb[2].mxu1 }
 0x17d   : > { %v381_v19 = vadd.f32 %v380_v17, %v284_v11  ;;  %v382_v20 = vpop.f32.mrb[1].mxu0  ;;  %v485_v21 = vadd.f32 %v609_v18, %v299_v16  ;;  %v479_v22 = vpop.f32.mrb[3].mxu1 }
 0x17e   : > { %v383_v23 = vadd.f32 %v382_v20, %v284_v11  ;;  %v480_v24 = vadd.f32 %v479_v22, %v294_v12 }
 0x17f   : > { %488 = vst [vmem:[%s815_s20] sm:$0xff] %v381_v19  ;;  %500 = vst.msk [vmem:[%s815_s20 + $0x58] sm:$0xff] %vm490_vm9, %v485_v21 }
 0x180   : > { %489 = vst [vmem:[%s815_s20 + $0x8] sm:$0xff] %v383_v23  ;;  %v386_v25 = vpop.f32.mrb[2].mxu0  ;;  %497 = vst.msk [vmem:[%s815_s20 + $0x40] sm:$0xff] %vm490_vm9, %v480_v24 }
 0x181   : > { %v387_v26 = vadd.f32 %v386_v25, %v289_v14  ;;  %v388_v27 = vpop.f32.mrb[3].mxu0 }
 0x182   : > { %v389_v28 = vadd.f32 %v388_v27, %v289_v14 }
 0x183   : > { %492 = vst [vmem:[%s815_s20 + $0x18] sm:$0xff] %v387_v26 }
 0x184   : > { %493 = vst [vmem:[%s815_s20 + $0x20] sm:$0xff] %v389_v28  ;;  %v392_v29 = vpop.f32.mrb[4].mxu0 }
 0x185   : > { %v393_v30 = vadd.f32 %v392_v29, %v294_v12  ;;  %v394_v31 = vpop.f32.mrb[5].mxu0 }
 0x186   : > { %v395_v32 = vadd.f32 %v394_v31, %v294_v12 }
 0x187   : > { %495 = vst [vmem:[%s815_s20 + $0x30] sm:$0xff] %v393_v30 }
 0x188   : > { %496 = vst [vmem:[%s815_s20 + $0x38] sm:$0xff] %v395_v32  ;;  %v398_v33 = vpop.f32.mrb[6].mxu0 }
 0x189   : > { %v399_v34 = vadd.f32 %v398_v33, %v299_v16  ;;  %v400_v35 = vpop.f32.mrb[7].mxu0 }
 0x18a   : > { %v401_v36 = vadd.f32 %v400_v35, %v299_v16 }
 0x18b   : > { %498 = vst [vmem:[%s815_s20 + $0x48] sm:$0xff] %v399_v34 }
 0x18c   : > { %499 = vst [vmem:[%s815_s20 + $0x50] sm:$0xff] %v401_v36 }
 0x18d PF: > { %s13_s12 = sadd.s32 1, %s705_s12  }
 0x18e   : > { %p10_p4 = scmp.ge.s32.totalorder %s13_s12, 4  }
 0x190   :  { %12 = sbr.rel (!%p10_p4) target bundleno = 1 (0x1), region = 62 }

</bundles_post_ra>
